<compile_context>
chip_gen: v5e
topology: v5e:2x2
jax: 0.10.0
libtpu: 0.0.40
codegen_flags: <defaults>
</compile_context>

<pallas_src>
import functools

import jax
import jax.numpy as jnp
from jax import lax
from jax.experimental import pallas as pl
from jax.experimental.pallas import tpu as pltpu

ALPHA = 0.25
GAMMA = 2.0  # implemented as an explicit square below (gamma == 2)


def _focal_loss_kernel(logits_ref, targets_ref, out_ref, acc_ref, *,
                       n_rows, tile_n, tiles_per_split):
    t = pl.program_id(1)  # reduction axis within this split

    @pl.when(t == 0)
    def _():
        acc_ref[...] = jnp.zeros_like(acc_ref)

    x = logits_ref[...]        # (tile_n, C) f32
    tgt = targets_ref[...]     # (tile_n, 1) i32
    c = x.shape[-1]

    # numerically-stable log-softmax pieces; reuse exp(x - m) for both the
    # log-sum-exp and pt (saves a second exp per row).
    m = jnp.max(x, axis=-1, keepdims=True)                       # (tile_n, 1)
    e = jnp.exp(x - m)                                           # (tile_n, C)
    sumexp = jnp.sum(e, axis=-1, keepdims=True)                  # (tile_n, 1)
    lse = jnp.log(sumexp) + m                                    # (tile_n, 1)

    class_ids = lax.broadcasted_iota(jnp.int32, (tile_n, c), 1)  # (tile_n, C)
    onehot = class_ids == tgt
    target_logit = jnp.sum(jnp.where(onehot, x, 0.0), axis=-1, keepdims=True)
    target_exp = jnp.sum(jnp.where(onehot, e, 0.0), axis=-1, keepdims=True)

    ce = lse - target_logit                                      # CE per row
    pt = target_exp * pl.reciprocal(sumexp, approx=False)        # == exp(-ce)
    omp = jnp.maximum(1.0 - pt, 0.0)                             # clamp: no NaN
    f_loss = ALPHA * omp * omp * ce                              # gamma = 2

    # mask rows beyond the true batch (partial last tile / clamped tiles)
    tile = pl.program_id(0) * tiles_per_split + t
    row_ids = tile * tile_n + lax.broadcasted_iota(jnp.int32, (tile_n, 1), 0)
    f_loss = jnp.where(row_ids < n_rows, f_loss, 0.0)

    acc_ref[...] += jnp.sum(f_loss, axis=0, keepdims=True)       # (1, 1)

    @pl.when(t == tiles_per_split - 1)
    def _():
        # lane-dense (1, 128) output block for this split; scalar broadcast.
        out_ref[...] = jnp.broadcast_to(acc_ref[...], out_ref.shape)


def focal_loss(logits: jax.Array, targets: jax.Array, *,
               tile_n: int | None = None) -> jax.Array:
    """logits: (N, C) float32 ; targets: (N,) int class ids. Returns scalar."""
    n, c = logits.shape
    targets2d = targets.astype(jnp.int32).reshape(n, 1)

    if tile_n is None:
        # ~2 MiB of logits per tile, multiple of 8 rows, capped at 2048 rows.
        # Double-buffered (logits + 128-lane-padded targets) stays well inside
        # the 32 MiB scoped-VMEM default on every generation (incl. v7x).
        tile_n = max(8, min(2048, (2 * 1024 * 1024) // max(4 * c, 1)))
        tile_n = (tile_n // 8) * 8
    assert tile_n % 8 == 0
    n_pad = ((n + 7) // 8) * 8
    tile_n = min(tile_n, max(8, n_pad))

    num_tiles = pl.cdiv(n, tile_n)
    num_splits = 2 if num_tiles >= 2 else 1   # 2 TCs on v7x; harmless elsewhere
    tiles_per_split = pl.cdiv(num_tiles, num_splits)

    def tile_idx(s, t):
        # clamp: tiles past the end (odd tile counts) re-read the last valid
        # block; their rows are fully masked inside the kernel.
        return jnp.minimum(s * tiles_per_split + t, num_tiles - 1)

    kernel = functools.partial(
        _focal_loss_kernel, n_rows=n, tile_n=tile_n,
        tiles_per_split=tiles_per_split)

    cost = pl.CostEstimate(
        flops=8 * n * c,
        transcendentals=n * c + 2 * n,
        bytes_accessed=4 * n * c + 4 * n + 4 * 128 * num_splits,
    )

    out = pl.pallas_call(
        kernel,
        out_shape=jax.ShapeDtypeStruct((1, 128 * num_splits), jnp.float32),
        grid_spec=pltpu.PrefetchScalarGridSpec(
            num_scalar_prefetch=0,
            grid=(num_splits, tiles_per_split),
            in_specs=[
                pl.BlockSpec((tile_n, c), lambda s, t: (tile_idx(s, t), 0)),
                pl.BlockSpec((tile_n, 1), lambda s, t: (tile_idx(s, t), 0)),
            ],
            out_specs=pl.BlockSpec((1, 128), lambda s, t: (0, s)),
            scratch_shapes=[pltpu.VMEM((1, 1), jnp.float32)],
        ),
        compiler_params=pltpu.CompilerParams(
            dimension_semantics=("parallel", "arbitrary")),
        cost_estimate=cost,
    )(logits, targets2d)

    partials = out.reshape(num_splits, 128)[:, 0]   # one partial sum per split
    return jnp.sum(partials) / jnp.float32(n)


def _reference(logits, targets):
    log_probs = jax.nn.log_softmax(logits, axis=-1)
    ce = -jnp.take_along_axis(log_probs, targets[:, None], axis=-1)[:, 0]
    pt = jnp.exp(-ce)
    return jnp.mean(ALPHA * (1.0 - pt) ** GAMMA * ce)


if __name__ == "__main__":
    key = jax.random.PRNGKey(0)
    k1, k2, k3, k4 = jax.random.split(key, 4)

    # Test 1: small shape matching the module's typical use (batch=8, classes=4)
    N, C = 8, 4
    logits = jax.random.normal(k1, (N, C), dtype=jnp.float32)
    targets = jax.random.randint(k2, (N,), 0, C, dtype=jnp.int32)
    loss = focal_loss(logits, targets)
    jax.block_until_ready(loss)
    ref = _reference(logits, targets)
    assert jnp.allclose(loss, ref, atol=1e-5, rtol=1e-5), (loss, ref)

    # Test 2: exercise the tiled / split / partial-tile path (still small).
    N2, C2 = 20, 4
    logits2 = jax.random.normal(k3, (N2, C2), dtype=jnp.float32)
    targets2 = jax.random.randint(k4, (N2,), 0, C2, dtype=jnp.int32)
    loss2 = focal_loss(logits2, targets2, tile_n=8)  # 3 tiles, 2 splits, mask
    jax.block_until_ready(loss2)
    ref2 = _reference(logits2, targets2)
    assert jnp.allclose(loss2, ref2, atol=1e-5, rtol=1e-5), (loss2, ref2)

    print("KERNEL_OK")
</pallas_src>

<mosaic_0001>
module attributes {stable_mosaic.version = 11 : i64} {
  func.func @_focal_loss_kernel(%arg0: i32, %arg1: i32, %arg2: memref<8x4xf32, #tpu.memory_space<vmem>>, %arg3: memref<8x1xi32, #tpu.memory_space<vmem>>, %arg4: memref<1x128xf32, #tpu.memory_space<vmem>>, %arg5: memref<1x1xf32, #tpu.memory_space<vmem>>) attributes {dimension_semantics = [#tpu.dimension_semantics<parallel>, #tpu.dimension_semantics<arbitrary>], iteration_bounds = array<i64: 1, 1>, scalar_prefetch = 0 : i64, scratch_operands = 1 : i64, tpu.core_type = #tpu.core_type<tc>, window_params = [{transform_indices = @transform_0, window_bounds = array<i64: 8, 4>}, {transform_indices = @transform_1, window_bounds = array<i64: 8, 1>}, {transform_indices = @transform_2, window_bounds = array<i64: 1, 128>}]} {
    %c0_i32 = arith.constant 0 : i32
    %0 = arith.cmpi eq, %arg1, %c0_i32 : i32
    %1 = arith.extui %0 : i1 to i32
    %c0_i32_0 = arith.constant 0 : i32
    %2 = arith.cmpi ne, %1, %c0_i32_0 : i32
    scf.if %2 {
      %cst_21 = arith.constant 0.000000e+00 : f32
      %54 = vector.broadcast %cst_21 : f32 to vector<1x1xf32>
      %c0_22 = arith.constant 0 : index
      %c0_23 = arith.constant 0 : index
      %55 = vector.load %arg5[%c0_22, %c0_23] : memref<1x1xf32, #tpu.memory_space<vmem>>, vector<1x1xf32>
      tpu.vector_store %arg5[%c0_22, %c0_23], %54 {strides = array<i32>} : memref<1x1xf32, #tpu.memory_space<vmem>>, vector<1x1xf32>,
    } else {
    }
    %c0 = arith.constant 0 : index
    %c0_1 = arith.constant 0 : index
    %3 = vector.load %arg2[%c0, %c0_1] : memref<8x4xf32, #tpu.memory_space<vmem>>, vector<8x4xf32>
    %c0_2 = arith.constant 0 : index
    %c0_3 = arith.constant 0 : index
    %4 = vector.load %arg3[%c0_2, %c0_3] : memref<8x1xi32, #tpu.memory_space<vmem>>, vector<8x1xi32>
    %cst = arith.constant dense<0xFF800000> : vector<8xf32>
    %5 = vector.multi_reduction <maximumf>, %3, %cst [1] : vector<8x4xf32> to vector<8xf32>
    %6 = vector.shape_cast %5 : vector<8xf32> to vector<8x1xf32>
    %7 = vector.broadcast %6 : vector<8x1xf32> to vector<8x4xf32>
    %8 = arith.subf %3, %7 : vector<8x4xf32>
    %9 = math.exp %8 : vector<8x4xf32>
    %cst_4 = arith.constant dense<0.000000e+00> : vector<8xf32>
    %10 = vector.multi_reduction <add>, %9, %cst_4 [1] : vector<8x4xf32> to vector<8xf32>
    %11 = vector.shape_cast %10 : vector<8xf32> to vector<8x1xf32>
    %12 = math.log %11 : vector<8x1xf32>
    %13 = arith.addf %12, %6 : vector<8x1xf32>
    %14 = tpu.iota {dimensions = array<i32: 1>} : vector<8x4xi32>
    %15 = vector.broadcast %4 : vector<8x1xi32> to vector<8x4xi32>
    %16 = arith.cmpi eq, %14, %15 : vector<8x4xi32>
    %cst_5 = arith.constant 0.000000e+00 : f32
    %17 = vector.broadcast %cst_5 : f32 to vector<8x4xf32>
    %18 = arith.select %16, %3, %17 : vector<8x4xi1>, vector<8x4xf32>
    %cst_6 = arith.constant dense<0.000000e+00> : vector<8xf32>
    %19 = vector.multi_reduction <add>, %18, %cst_6 [1] : vector<8x4xf32> to vector<8xf32>
    %20 = vector.shape_cast %19 : vector<8xf32> to vector<8x1xf32>
    %cst_7 = arith.constant 0.000000e+00 : f32
    %21 = vector.broadcast %cst_7 : f32 to vector<8x4xf32>
    %22 = arith.select %16, %9, %21 : vector<8x4xi1>, vector<8x4xf32>
    %cst_8 = arith.constant dense<0.000000e+00> : vector<8xf32>
    %23 = vector.multi_reduction <add>, %22, %cst_8 [1] : vector<8x4xf32> to vector<8xf32>
    %24 = vector.shape_cast %23 : vector<8xf32> to vector<8x1xf32>
    %25 = arith.subf %13, %20 : vector<8x1xf32>
    %26 = tpu.reciprocal %11 : vector<8x1xf32> -> vector<8x1xf32>
    %27 = arith.mulf %24, %26 : vector<8x1xf32>
    %cst_9 = arith.constant 1.000000e+00 : f32
    %28 = vector.broadcast %cst_9 : f32 to vector<8x1xf32>
    %29 = arith.subf %28, %27 : vector<8x1xf32>
    %cst_10 = arith.constant 0.000000e+00 : f32
    %30 = vector.broadcast %cst_10 : f32 to vector<8x1xf32>
    %31 = arith.maximumf %29, %30 : vector<8x1xf32>
    %cst_11 = arith.constant 2.500000e-01 : f32
    %32 = vector.broadcast %cst_11 : f32 to vector<8x1xf32>
    %33 = arith.mulf %32, %31 : vector<8x1xf32>
    %34 = arith.mulf %33, %31 : vector<8x1xf32>
    %35 = arith.mulf %34, %25 : vector<8x1xf32>
    %c1_i32 = arith.constant 1 : i32
    %36 = arith.muli %arg0, %c1_i32 : i32
    %37 = arith.addi %36, %arg1 : i32
    %c8_i32 = arith.constant 8 : i32
    %38 = arith.muli %37, %c8_i32 : i32
    %39 = tpu.iota {dimensions = array<i32: 0>} : vector<8x1xi32>
    %40 = vector.broadcast %38 : i32 to vector<8x1xi32>
    %41 = arith.addi %40, %39 : vector<8x1xi32>
    %c8_i32_12 = arith.constant 8 : i32
    %42 = vector.broadcast %c8_i32_12 : i32 to vector<8x1xi32>
    %43 = arith.cmpi slt, %41, %42 : vector<8x1xi32>
    %cst_13 = arith.constant 0.000000e+00 : f32
    %44 = vector.broadcast %cst_13 : f32 to vector<8x1xf32>
    %45 = arith.select %43, %35, %44 : vector<8x1xi1>, vector<8x1xf32>
    %c0_14 = arith.constant 0 : index
    %c0_15 = arith.constant 0 : index
    %46 = vector.load %arg5[%c0_14, %c0_15] : memref<1x1xf32, #tpu.memory_space<vmem>>, vector<1x1xf32>
    %cst_16 = arith.constant dense<0.000000e+00> : vector<1xf32>
    %47 = vector.multi_reduction <add>, %45, %cst_16 [0] : vector<8x1xf32> to vector<1xf32>
    %48 = vector.shape_cast %47 : vector<1xf32> to vector<1x1xf32>
    %49 = arith.addf %46, %48 : vector<1x1xf32>
    %c0_17 = arith.constant 0 : index
    %c0_18 = arith.constant 0 : index
    %50 = vector.load %arg5[%c0_17, %c0_18] : memref<1x1xf32, #tpu.memory_space<vmem>>, vector<1x1xf32>
    tpu.vector_store %arg5[%c0_17, %c0_18], %49 {strides = array<i32>} : memref<1x1xf32, #tpu.memory_space<vmem>>, vector<1x1xf32>,
    %c0_i32_19 = arith.constant 0 : i32
    %51 = arith.cmpi eq, %arg1, %c0_i32_19 : i32
    %52 = arith.extui %51 : i1 to i32
    %c0_i32_20 = arith.constant 0 : i32
    %53 = arith.cmpi ne, %52, %c0_i32_20 : i32
    scf.if %53 {
      %c0_21 = arith.constant 0 : index
      %c0_22 = arith.constant 0 : index
      %54 = vector.load %arg5[%c0_21, %c0_22] : memref<1x1xf32, #tpu.memory_space<vmem>>, vector<1x1xf32>
      %55 = vector.shape_cast %54 : vector<1x1xf32> to vector<1x1xf32>
      %56 = vector.broadcast %55 : vector<1x1xf32> to vector<1x128xf32>
      %c0_23 = arith.constant 0 : index
      %c0_24 = arith.constant 0 : index
      %57 = vector.load %arg4[%c0_23, %c0_24] : memref<1x128xf32, #tpu.memory_space<vmem>>, vector<1x128xf32>
      tpu.vector_store %arg4[%c0_23, %c0_24], %56 {strides = array<i32>} : memref<1x128xf32, #tpu.memory_space<vmem>>, vector<1x128xf32>,
    } else {
    }
    return
  }
  func.func @transform_0(%arg0: i32, %arg1: i32) -> (i32, i32) {
    %c1_i32 = arith.constant 1 : i32
    %0 = arith.muli %arg0, %c1_i32 : i32
    %1 = arith.addi %0, %arg1 : i32
    %c0_i32 = arith.constant 0 : i32
    %2 = arith.minsi %1, %c0_i32 : i32
    %c0_i32_0 = arith.constant 0 : i32
    %c0_i32_1 = arith.constant 0 : i32
    return %2, %c0_i32_0 : i32, i32
  }
  func.func @transform_1(%arg0: i32, %arg1: i32) -> (i32, i32) {
    %c1_i32 = arith.constant 1 : i32
    %0 = arith.muli %arg0, %c1_i32 : i32
    %1 = arith.addi %0, %arg1 : i32
    %c0_i32 = arith.constant 0 : i32
    %2 = arith.minsi %1, %c0_i32 : i32
    %c0_i32_0 = arith.constant 0 : i32
    %c0_i32_1 = arith.constant 0 : i32
    return %2, %c0_i32_0 : i32, i32
  }
  func.func @transform_2(%arg0: i32, %arg1: i32) -> (i32, i32) {
    %c0_i32 = arith.constant 0 : i32
    %c0_i32_0 = arith.constant 0 : i32
    return %c0_i32, %arg0 : i32, i32
  }
}

</mosaic_0001>

<bundles_post_ra>
// kernel: tpu_custom_call.1
= control target key start
LH: loop header
LB: loop body
LE: loop exit
PB: predicated region body
PF: predicated region fallthrough
CT: control target
= control target key end

     0   :  { %vm74_vm0 = vcmask 31744   ;;  %s249_s0 = inlined_call_operand.vmem [shape: f32[8,4], index: 0, kind: input, shape index: {}]   ;;  %s250_s1 = inlined_call_operand.vmem [shape: s32[8,1], index: 1, kind: input, shape index: {}]   ;;  %s251_s2 = inlined_call_operand.hbm [shape: f32[1,128], index: 2, kind: output, shape index: {}]  }
   0x1   :  { %v72_v0 = vld [vmem:[%s249_s0] sm:$0xff] }
   0x2   :  { %7 = vsyncpa [#allocation4], 0  ;;  %v75_v1 = vsel %vm74_vm0, %v72_v0, -inf  ;;  %v216_v2 = vmov 0   ;;  %v73_v3 = vld [vmem:[%s250_s1] sm:$0xff]  ;;  %v87_v9 = vlaneseq  ;;  %vm70_vm2 = vcmask 0  }
   0x3   :  { %182 = vset.pattern.permute.xlu0 %v216_v2  ;;  %183 = vset.pattern.permute.xlu2 %v216_v2  ;;  %v217_v16 = vmov 0.0   ;;  %s218_s0 = smov [#allocation3]   ;;  %s158_s15 = sshll.u32 %s251_s2, 4  ;;  %s159_s15 = int_to_ptr.hbm [resolvable:$true] %s158_s15 }
   0x4   :  { %76 = vmax.xlane.f32.xlu0 %v75_v1  ;;  %v88_v10 = vand.u32 127, %v87_v9  ;;  %71 = vst.msk [vmem:[#allocation2] sm:$0x1] %vm70_vm2, %v217_v16  ;;  %s156_s1 = sshll.u32 %s218_s0, 4  ;;  %s157_s1 = int_to_ptr.vmem [resolvable:$true] %s156_s1 }
   0xb   :  { %v130_v45 = vld [vmem:[#allocation2] sm:$0x1] }
  0x18   :  { %90 = vperm.xlu0 %182, %v73_v3  }
  0x77   :  { %v77_v4 = vpop.xlane.xlu0 %76 }
  0x78   :  { %v78_v5 = vsub.f32 %v72_v0, %v77_v4 }
  0x7a   :  { %v79_v6 = vmul.f32 1.442695, %v78_v5 }
  0x7c   :  { %184 = vpow2.f32 %v79_v6 }
  0x82   :  { %v185_v7 = vpop.eup %184 }
  0x83   :  { %v81_v8 = vsel %vm74_vm0, %v185_v7, 0.0 }
  0x84   :  { %82 = vadd.xlane.f32.xlu1 %v81_v8 }
  0x8a   :  { %v91_v11 = vpop.permute.xlu0 %90 }
  0x8b   :  { %vm92_vm1 = vcmp.eq.s32.totalorder %v88_v10, %v91_v11 }
  0x8c   :  { %v97_v12 = vsel %vm92_vm1, %v185_v7, 0.0  ;;  %v93_v13 = vsel %vm92_vm1, %v72_v0, 0.0 }
  0x8d   :  { %v98_v14 = vsel %vm74_vm0, %v97_v12, 0.0  ;;  %v94_v15 = vsel %vm74_vm0, %v93_v13, 0.0 }
  0x8e   :  { %99 = vadd.xlane.f32.xlu1 %v98_v14  ;;  %95 = vadd.xlane.f32.xlu2 %v94_v15 }
  0xf7   :  { %v83_v17 = vpop.xlane.xlu1 %82 }
  0xf8   :  { %186 = vrcp.f32 %v83_v17  ;;  %v113_v21 = vand.u32 2147483648, %v83_v17  ;;  %v111_v23 = vand.u32 2147483647, %v83_v17  ;;  %vm107_vm4 = vweird.f32 %v83_v17 }
  0xf9   :  { %188 = vlog2.f32 %v83_v17 }
  0xfa   :  { %v114_v26 = vor.u32 1.1754944e-38, %v113_v21  ;;  %vm112_vm6 = vcmp.eq.f32.partialorder %v111_v23, 8.507059e+37 }
  0xfe   :  { %v187_v18 = vpop.eup %186 }
  0xff   :  { %v103_v19 = vmul.f32 %v187_v18, %v83_v17  ;;  %vm108_vm3 = vweird.f32 %v187_v18  ;;  %v189_v25 = vpop.eup %188 }
 0x100   :  { %vm109_vm5 = vmor %vm107_vm4, %vm108_vm3  ;;  %v85_v31 = vmul.f32 0.6931472, %v189_v25 }
 0x101   :  { %v104_v20 = vsub.f32 1.0, %v103_v19  ;;  %v100_v29 = vpop.xlane.xlu1 %99  ;;  %v96_v35 = vpop.xlane.xlu2 %95 }
 0x102   :  { %v86_v34 = vadd.f32 %v85_v31, %v77_v4 }
 0x103   :  { %v105_v22 = vmul.f32 %v187_v18, %v104_v20 }
 0x104   :  { %v101_v38 = vsub.f32 %v86_v34, %v96_v35 }
 0x105   :  { %v106_v24 = vadd.f32 %v187_v18, %v105_v22 }
 0x107   :  { %v110_v27 = vsel %vm109_vm5, %v187_v18, %v106_v24 }
 0x108   :  { %v115_v28 = vsel %vm112_vm6, %v114_v26, %v110_v27 }
 0x109   :  { %v116_v30 = vmul.f32 %v115_v28, %v100_v29 }
 0x10b   :  { %v117_v32 = vsub.f32 1.0, %v116_v30 }
 0x10d   :  { %v118_v33 = vmax.f32 %v117_v32, 0.0 }
 0x10f   :  { %v119_v36 = vmul.f32 0.25, %v118_v33 }
 0x111   :  { %v120_v37 = vmul.f32 %v119_v36, %v118_v33 }
 0x113   :  { %v121_v39 = vmul.f32 %v120_v37, %v101_v38 }
 0x115   :  { %v131_v40 = vrot.slane %v121_v39, 4 }
 0x117   :  { %v132_v41 = vadd.f32 %v131_v40, %v121_v39 }
 0x119   :  { %v133_v42 = vrot.slane %v132_v41, 2 }
 0x11b   :  { %v134_v43 = vadd.f32 %v133_v42, %v132_v41 }
 0x11d   :  { %v135_v44 = vrot.slane %v134_v43, 1 }
 0x11f   :  { %v136_v46 = vadd.f32 %v135_v44, %v134_v43 }
 0x121   :  { %v137_v47 = vadd.f32 %v136_v46, %v130_v45 }
 0x123   :  { %139 = vst.msk [vmem:[#allocation2] sm:$0x1] %vm70_vm2, %v137_v47 }
 0x12a   :  { %v143_v48 = vld [vmem:[#allocation2] sm:$0x1] }
 0x12b   :  { %146 = vperm.xlu2 %183, %v143_v48  }
 0x185   :  { %v147_v49 = vpop.permute.xlu2 %146 }
 0x186   :  { %v149_v50 = vperm.slane %v147_v49, 0 }
 0x188   :  { %150 = vst [vmem:[#allocation3] sm:$0x1] %v149_v50 }
 0x189   :  { %161 = dma.vmem_to_hbm [thread:$0]  %s157_s1, 16, %s159_s15, [#allocation4]  }
 0x18a   :  { %214 = dma.done.wait [#allocation4], 16  }
 0x18b   :  { %215 = vsyncadd [#allocation4], 4294967280 }
 0x18c   :  { %166 = vsyncpa [#allocation4], 1 }

</bundles_post_ra>
